<compile_context>
chip_gen: v7x
topology: tpu7x:2x2x1
jax: 0.10.0
libtpu: 0.0.40
codegen_flags: <defaults>
</compile_context>

<pallas_src>
import functools

import jax
import jax.numpy as jnp
from jax.experimental import pallas as pl
from jax.experimental.pallas import tpu as pltpu


def _round_up(v, m):
    return ((v + m - 1) // m) * m


def _conv1d_relu_kernel(x_ref, h_ref, w_ref, b_ref, o_ref, *, K, cout, tj):
    # x_ref: (Cin8, TJ)       main input tile (sequence on the lane axis)
    # h_ref: (Cin8, 128)      next-128-columns halo view of the same padded x
    # w_ref: (K*Cout, Cin8)   folded conv taps (VMEM-resident)
    # b_ref: (Cout, 1)        bias (VMEM-resident)
    # o_ref: (Cout, TJ)       output tile (lane-dense)
    xa = jnp.concatenate([x_ref[...], h_ref[...]], axis=1)       # (Cin8, TJ+128)

    # Single MXU matmul covering all K taps, f32 accumulation.
    z = jnp.dot(w_ref[...], xa, preferred_element_type=jnp.float32)

    # Sum the K statically shifted tap images; acc seeded from tap 0.
    acc = z[0:cout, 0:tj]
    for k in range(1, K):                     # static unroll over taps
        acc = acc + z[k * cout:(k + 1) * cout, k:k + tj]

    acc = acc + b_ref[...]                    # bias broadcast over lanes
    o_ref[...] = jnp.maximum(acc, 0.0).astype(o_ref.dtype)


def part_iii_convolutional(x, weight, bias, *, tj_max=1024,
                           compute_dtype=jnp.float32):
    """Forward pass of PartIII_Convolutional (Conv1d 'same' + ReLU).

    Args:
      x:      (num_jobs, p_tilde_dim) float32
      weight: (conv_out_channels, p_tilde_dim, K) float32 (PyTorch Conv1d layout)
      bias:   (conv_out_channels,) float32
      tj_max: max sequence columns per grid step (rounded to 128).
      compute_dtype: dtype of MXU operands (f32 accumulation either way);
                     jnp.bfloat16 selects the fast MXU path on v5e/v6e/v7x.

    Returns:
      (num_jobs, conv_out_channels) float32
    """
    num_jobs, cin = x.shape
    cout, cin_w, K = weight.shape
    assert cin == cin_w
    # TODO(synk): even kernel sizes (asymmetric 'same' padding) not wired up.
    assert K % 2 == 1 and K <= 129, "odd kernel_size <= 129 supported"
    pad_left = (K - 1) // 2

    cin8 = _round_up(cin, 8)              # sublane-aligned channel count

    # Tile over the sequence (lane) axis: multiple of 128; aim for >= 2 grid
    # steps once num_jobs > 128 so both v7x TensorCores get work; cap at
    # tj_max so per-step VMEM stays bounded for very long sequences.
    tj_cap = max(128, _round_up(tj_max, 128))
    tj = _round_up((num_jobs + 1) // 2, 128) if num_jobs > 128 else 128
    tj = min(tj, tj_cap)
    ntiles = pl.cdiv(num_jobs, tj)
    tjb = tj // 128                        # halo block stride in 128-lane blocks
    L = ntiles * tj + 128                  # padded length incl. halo slack

    # Transposed + padded input (one fused XLA op: transpose + pad + cast).
    # Columns [pad_left, pad_left + num_jobs) hold x^T; the rest are the
    # 'same' zero padding and halo slack, so no in-kernel ragged masking.
    x_t = jnp.transpose(x).astype(compute_dtype)
    x_pad = jnp.pad(x_t, ((0, cin8 - cin),
                          (pad_left, L - pad_left - num_jobs)))

    # Folded weights: row k*Cout + co, column ci  =  weight[co, ci, k].
    w_fold = jnp.transpose(weight, (2, 0, 1)).reshape(K * cout, cin)
    w_fold = jnp.pad(w_fold, ((0, 0), (0, cin8 - cin))).astype(compute_dtype)
    b2 = bias.reshape(cout, 1).astype(jnp.float32)

    kernel = functools.partial(_conv1d_relu_kernel, K=K, cout=cout, tj=tj)

    # VMEM budget with (8,128) layout padding: double-buffered streams +
    # resident weights/bias + the (K*Cout, TJ+128) matmul intermediate.
    cs = jnp.dtype(compute_dtype).itemsize
    per_step = (cin8 * tj * cs                      # main x tile
                + cin8 * 128 * cs                   # halo tile
                + _round_up(cout, 8) * tj * 4)      # out tile
    resident = (_round_up(K * cout, 8) * _round_up(cin8, 128) * cs
                + _round_up(cout, 8) * 128 * 4)
    interm = _round_up(K * cout, 8) * _round_up(tj + 128, 128) * 4
    need = 2 * per_step + 2 * resident + interm
    vmem_limit = int(min(48 * 1024 * 1024, max(16 * 1024 * 1024, 4 * need)))

    y_pad = pl.pallas_call(
        kernel,
        out_shape=jax.ShapeDtypeStruct((cout, ntiles * tj), jnp.float32),
        grid=(ntiles,),
        in_specs=[
            pl.BlockSpec((cin8, tj), lambda i: (0, i)),               # main tile
            pl.BlockSpec((cin8, 128), lambda i: (0, (i + 1) * tjb)),  # halo view
            pl.BlockSpec((K * cout, cin8), lambda i: (0, 0)),         # weights
            pl.BlockSpec((cout, 1), lambda i: (0, 0)),                # bias
        ],
        out_specs=pl.BlockSpec((cout, tj), lambda i: (0, i)),
        compiler_params=pltpu.CompilerParams(
            dimension_semantics=("parallel",),
            vmem_limit_bytes=vmem_limit,
        ),
    )(x_pad, x_pad, w_fold, b2)

    # Drop tile-padding columns and return (num_jobs, Cout); fuses into one op.
    return jnp.transpose(y_pad[:, :num_jobs])


def _reference(x, weight, bias):
    """Pure-JAX reference matching PyTorch Conv1d(padding='same') + ReLU."""
    num_jobs, cin = x.shape
    cout, _, K = weight.shape
    pad_left = (K - 1) // 2
    pad_right = K - 1 - pad_left
    x_pad = jnp.pad(x, ((pad_left, pad_right), (0, 0)))
    y = jnp.zeros((num_jobs, cout), jnp.float32)
    for k in range(K):
        y = y + x_pad[k:k + num_jobs, :] @ weight[:, :, k].T
    y = y + bias[None, :]
    return jnp.maximum(y, 0.0)


if __name__ == "__main__":
    key = jax.random.PRNGKey(0)
    kx, kw, kb, kx2 = jax.random.split(key, 4)

    # Small shapes consistent with the module: (num_jobs, p_tilde_dim).
    num_jobs = 8
    p_tilde_dim = 4
    conv_out_channels = 16
    K = 3

    x = jax.random.normal(kx, (num_jobs, p_tilde_dim), dtype=jnp.float32)
    weight = 0.1 * jax.random.normal(
        kw, (conv_out_channels, p_tilde_dim, K), dtype=jnp.float32)
    bias = 0.1 * jax.random.normal(kb, (conv_out_channels,), dtype=jnp.float32)

    y = jax.block_until_ready(part_iii_convolutional(x, weight, bias))
    y_ref = _reference(x, weight, bias)
    assert y.shape == (num_jobs, conv_out_channels)
    assert jnp.allclose(y, y_ref, atol=1e-5, rtol=1e-5)

    # Multi-tile path: grid > 1, halo BlockSpec across tile boundaries, ragged
    # tail columns sliced off in the wrapper.
    num_jobs2 = 300
    x2 = jax.random.normal(kx2, (num_jobs2, p_tilde_dim), dtype=jnp.float32)
    y2 = jax.block_until_ready(
        part_iii_convolutional(x2, weight, bias, tj_max=128))
    y2_ref = _reference(x2, weight, bias)
    assert y2.shape == (num_jobs2, conv_out_channels)
    assert jnp.allclose(y2, y2_ref, atol=1e-5, rtol=1e-5)

    # bf16 MXU operands with f32 accumulation (fast MXU path on v5e/v6e/v7x).
    y3 = jax.block_until_ready(
        part_iii_convolutional(x2, weight, bias, tj_max=128,
                               compute_dtype=jnp.bfloat16))
    assert jnp.allclose(y3, y2_ref, atol=2e-2, rtol=2e-2)

    print("KERNEL_OK")
</pallas_src>

<mosaic_0001>
module attributes {stable_mosaic.version = 11 : i64} {
  func.func @_conv1d_relu_kernel(%arg0: i32, %arg1: memref<8x128xf32, #tpu.memory_space<vmem>>, %arg2: memref<8x128xf32, #tpu.memory_space<vmem>>, %arg3: memref<48x8xf32, #tpu.memory_space<vmem>>, %arg4: memref<16x1xf32, #tpu.memory_space<vmem>>, %arg5: memref<16x128xf32, #tpu.memory_space<vmem>>) attributes {dimension_semantics = [#tpu.dimension_semantics<parallel>], iteration_bounds = array<i64: 1>, scalar_prefetch = 0 : i64, scratch_operands = 0 : i64, tpu.core_type = #tpu.core_type<tc>, window_params = [{transform_indices = @transform_0, window_bounds = array<i64: 8, 128>}, {transform_indices = @transform_1, window_bounds = array<i64: 8, 128>}, {pipeline_mode = #tpu.pipeline_mode<synchronous>, transform_indices = @transform_2, window_bounds = array<i64: 48, 8>}, {pipeline_mode = #tpu.pipeline_mode<synchronous>, transform_indices = @transform_3, window_bounds = array<i64: 16, 1>}, {transform_indices = @transform_4, window_bounds = array<i64: 16, 128>}]} {
    %c0 = arith.constant 0 : index
    %c0_0 = arith.constant 0 : index
    %0 = vector.load %arg1[%c0, %c0_0] : memref<8x128xf32, #tpu.memory_space<vmem>>, vector<8x128xf32>
    %c0_1 = arith.constant 0 : index
    %c0_2 = arith.constant 0 : index
    %1 = vector.load %arg2[%c0_1, %c0_2] : memref<8x128xf32, #tpu.memory_space<vmem>>, vector<8x128xf32>
    %2 = tpu.concatenate %0, %1 in 1 : vector<8x128xf32>, vector<8x128xf32> -> vector<8x256xf32>
    %c0_3 = arith.constant 0 : index
    %c0_4 = arith.constant 0 : index
    %3 = vector.load %arg3[%c0_3, %c0_4] : memref<48x8xf32, #tpu.memory_space<vmem>>, vector<48x8xf32>
    %cst = arith.constant dense<0.000000e+00> : vector<48x256xf32>
    %4 = tpu.matmul %3, %2, %cst {dimension_numbers = #tpu.dot_dimension_numbers<[1], [0], [0], [1], [0, 0, 1, 1], [], []>} : vector<48x8xf32>, vector<8x256xf32>, vector<48x256xf32> -> vector<48x256xf32>
    %5 = vector.extract_strided_slice %4 {offsets = [0, 0], sizes = [16, 128], strides = [1, 1]} : vector<48x256xf32> to vector<16x128xf32>
    %6 = vector.extract_strided_slice %4 {offsets = [16, 1], sizes = [16, 128], strides = [1, 1]} : vector<48x256xf32> to vector<16x128xf32>
    %7 = arith.addf %5, %6 : vector<16x128xf32>
    %8 = vector.extract_strided_slice %4 {offsets = [32, 2], sizes = [16, 128], strides = [1, 1]} : vector<48x256xf32> to vector<16x128xf32>
    %9 = arith.addf %7, %8 : vector<16x128xf32>
    %c0_5 = arith.constant 0 : index
    %c0_6 = arith.constant 0 : index
    %10 = vector.load %arg4[%c0_5, %c0_6] : memref<16x1xf32, #tpu.memory_space<vmem>>, vector<16x1xf32>
    %11 = vector.broadcast %10 : vector<16x1xf32> to vector<16x128xf32>
    %12 = arith.addf %9, %11 : vector<16x128xf32>
    %cst_7 = arith.constant 0.000000e+00 : f32
    %13 = vector.broadcast %cst_7 : f32 to vector<16x128xf32>
    %14 = arith.maximumf %12, %13 : vector<16x128xf32>
    %c0_8 = arith.constant 0 : index
    %c0_9 = arith.constant 0 : index
    %15 = vector.load %arg5[%c0_8, %c0_9] : memref<16x128xf32, #tpu.memory_space<vmem>>, vector<16x128xf32>
    tpu.vector_store %arg5[%c0_8, %c0_9], %14 {strides = array<i32>} : memref<16x128xf32, #tpu.memory_space<vmem>>, vector<16x128xf32>,
    return
  }
  func.func @transform_0(%arg0: i32) -> (i32, i32) {
    %c0_i32 = arith.constant 0 : i32
    %c0_i32_0 = arith.constant 0 : i32
    return %c0_i32, %arg0 : i32, i32
  }
  func.func @transform_1(%arg0: i32) -> (i32, i32) {
    %c1_i32 = arith.constant 1 : i32
    %0 = arith.addi %arg0, %c1_i32 : i32
    %c1_i32_0 = arith.constant 1 : i32
    %1 = arith.muli %0, %c1_i32_0 : i32
    %c0_i32 = arith.constant 0 : i32
    %c0_i32_1 = arith.constant 0 : i32
    return %c0_i32, %1 : i32, i32
  }
  func.func @transform_2(%arg0: i32) -> (i32, i32) {
    %c0_i32 = arith.constant 0 : i32
    %c0_i32_0 = arith.constant 0 : i32
    %c0_i32_1 = arith.constant 0 : i32
    return %c0_i32, %c0_i32_0 : i32, i32
  }
  func.func @transform_3(%arg0: i32) -> (i32, i32) {
    %c0_i32 = arith.constant 0 : i32
    %c0_i32_0 = arith.constant 0 : i32
    %c0_i32_1 = arith.constant 0 : i32
    return %c0_i32, %c0_i32_0 : i32, i32
  }
  func.func @transform_4(%arg0: i32) -> (i32, i32) {
    %c0_i32 = arith.constant 0 : i32
    %c0_i32_0 = arith.constant 0 : i32
    return %c0_i32, %arg0 : i32, i32
  }
}

</mosaic_0001>

<bundles_post_ra>
// kernel: tpu_custom_call.1
= control target key start
LH: loop header
LB: loop body
LE: loop exit
PB: predicated region body
PF: predicated region fallthrough
CT: control target
= control target key end

     0   :  { %vm43_vm0 = vcmask 64512   ;;  %v280_v4 = vmov 0.0   ;;  %s360_s0 = inlined_call_operand.vmem [shape: f32[8,256], index: 0, kind: input, shape index: {}]   ;;  %s361_s1 = inlined_call_operand.vmem [shape: f32[8,256], index: 1, kind: input, shape index: {}]   ;;  %s362_s2 = inlined_call_operand.vmem [shape: f32[48,8], index: 2, kind: input, shape index: {}]   ;;  %s363_s3 = inlined_call_operand.vmem [shape: f32[16,1], index: 3, kind: input, shape index: {}]   ;;  %s364_s4 = inlined_call_operand.hbm [shape: f32[16,128], index: 4, kind: output, shape index: {}]  }
   0x1   :  { %v239_v0 = vld [vmem:[%s361_s1 + $0x8] sm:$0xff]  ;;  %v35_v1 = vld [vmem:[%s360_s0] sm:$0xff]  ;;  %v40_v3 = vld [vmem:[%s362_s2 + $0x18] sm:$0xff]  ;;  %126 = vmatprep.mubr.f32.mxu0 %v280_v4  ;;  %142 = vmatprep.mubr.f32.mxu1 %v280_v4 }
   0x2   :  { %62 = vmatprep.subr.mxu0 %v239_v0  ;;  %246 = vmatprep.subr.mxu1 %v239_v0  ;;  %v37_v2 = vld [vmem:[%s362_s2] sm:$0xff] }
   0x3   :  { %63 = vmatpush1.msra.mxu0 %v35_v1  ;;  %247 = vmatpush1.msra.mxu1 %v35_v1 }
   0x4   :  { %9 = vsyncpa [#allocation3], 0  ;;  %240 = vmatmul.mubr.msk.f32.vlgmr.msra.gmra.mrb[0].mxu0 %vm43_vm0, %v37_v2  ;;  %243 = vmatmul.mubr.msk.f32.vlgmr.msra.gmra.mrb[0].mxu1 %vm43_vm0, %v40_v3  ;;  %v199_v5 = vld [vmem:[%s363_s3] sm:$0xff]  ;;  %v38_v6 = vld [vmem:[%s362_s2 + $0x8] sm:$0xff]  ;;  %v281_v8 = vmov 0   ;;  %s282_s7 = smov 127  }
   0x5   :  { %131 = vmatprep.mubr.f32.mxu0 %v280_v4  ;;  %148 = vmatprep.mubr.f32.mxu1 %v280_v4  ;;  %v41_v7 = vld [vmem:[%s362_s2 + $0x20] sm:$0xff]  ;;  %v200_v9 = vld [vmem:[%s363_s3 + $0x8] sm:$0xff]  ;;  %v39_v10 = vld [vmem:[%s362_s2 + $0x10] sm:$0xff]  ;;  %s283_s3 = smov 126   ;;  %vm173_vm1 = vcmask 1039360   ;;  %vm192_vm2 = vcmask 1031168  }
   0x6   :  { %255 = vset.pattern.permute.xlu0 %v281_v8  ;;  %v42_v11 = vld [vmem:[%s362_s2 + $0x28] sm:$0xff]  ;;  %s284_s2 = smov [#allocation2]  }
   0x7   :  { %203 = vperm.xlu0 %255, %v199_v5   ;;  %s222_s8 = sshll.u32 %s284_s2, 4  ;;  %s223_s8 = int_to_ptr.vmem [resolvable:$true] %s222_s8 }
   0x8   :  { %241 = vmatmul.mubr.msk.f32.gmra.mrb[2].mxu0 %vm43_vm0, %v38_v6  ;;  %244 = vmatmul.mubr.msk.f32.gmra.mrb[2].mxu1 %vm43_vm0, %v41_v7  ;;  %s256_s9 = scalar_lea.vmem %s223_s8, 256  ;;  %p261_p1 = scmp.lt.s32.totalorder %s223_s8, %s223_s8 }
   0x9   :  { %136 = vmatprep.mubr.f32.mxu0 %v280_v4  ;;  %154 = vmatprep.mubr.f32.mxu1 %v280_v4  ;;  %p257_p0 = scmp.ne.s32.totalorder %s223_s8, %s256_s9  ;;  %p262_p2 = scmp.lt.s32.totalorder %s256_s9, %s256_s9 }
   0xb   :  { %208 = vperm.xlu0 %255, %v200_v9   ;;  %p263_p3 = por %p262_p2, %p261_p1 }
   0xc   :  { %242 = vmatmul.mubr.msk.f32.gmra.mrb[4].mxu0 %vm43_vm0, %v39_v10  ;;  %245 = vmatmul.mubr.msk.f32.gmra.mrb[4].mxu1 %vm43_vm0, %v42_v11 }
   0xd   :  { %p264_p4 = pnand %p263_p3, %p257_p0 }
  0x86   :  { %v204_v24 = vpop.permute.xlu0 %203 }
  0x8a   :  { %v209_v25 = vpop.permute.xlu0 %208 }
  0xd7   :  { %v128_v12 = vpop.f32.mrb[0].mxu0  ;;  %v144_v13 = vpop.f32.mrb[0].mxu1 }
  0xd8   :  { %169 = vrot.lane.b32.xlu0 %v144_v13, %s282_s7  ;;  %v130_v14 = vpop.f32.mrb[1].mxu0  ;;  %v146_v15 = vpop.f32.mrb[1].mxu1 }
  0xd9   :  { %171 = vrot.lane.b32.xlu1 %v146_v15, %s282_s7 }
  0xdb   :  { %v133_v16 = vpop.f32.mrb[2].mxu0  ;;  %v150_v17 = vpop.f32.mrb[2].mxu1 }
  0xdc   :  { %184 = vrot.lane.b32.xlu0 %v150_v17, %s283_s3  ;;  %v135_v18 = vpop.f32.mrb[3].mxu0  ;;  %v152_v19 = vpop.f32.mrb[3].mxu1 }
  0xdd   :  { %186 = vrot.lane.b32.xlu1 %v152_v19, %s283_s3 }
  0xdf   :  { %v138_v20 = vpop.f32.mrb[4].mxu0  ;;  %v156_v21 = vpop.f32.mrb[4].mxu1 }
  0xe0   :  { %v140_v22 = vpop.f32.mrb[5].mxu0  ;;  %v158_v23 = vpop.f32.mrb[5].mxu1  ;;  %188 = vrot.lane.b32.xlu0 %v156_v21, %s283_s3 }
  0xe1   :  { %165 = vrot.lane.b32.xlu1 %v138_v20, %s282_s7 }
  0xe5   :  { %167 = vrot.lane.b32.xlu1 %v140_v22, %s282_s7 }
  0xe9   :  { %190 = vrot.lane.b32.xlu1 %v158_v23, %s283_s3 }
 0x14a   :  { %v170_v27 = vpop.permute.xlu0 %169 }
 0x14b   :  { %v172_v26 = vpop.permute.xlu1 %171 }
 0x14c   :  { %v175_v32 = vsel %vm173_vm1, %v170_v27, %v172_v26 }
 0x14d   :  { %v179_v37 = vadd.f32 %v175_v32, %v133_v16 }
 0x14e   :  { %v185_v30 = vpop.permute.xlu0 %184 }
 0x14f   :  { %v187_v28 = vpop.permute.xlu1 %186 }
 0x150   :  { %v193_v36 = vsel %vm192_vm2, %v185_v30, %v187_v28 }
 0x152   :  { %v189_v35 = vpop.permute.xlu0 %188 }
 0x153   :  { %v166_v29 = vpop.permute.xlu1 %165 }
 0x157   :  { %v168_v31 = vpop.permute.xlu1 %167 }
 0x158   :  { %v174_v33 = vsel %vm173_vm1, %v166_v29, %v168_v31 }
 0x159   :  { %v178_v34 = vadd.f32 %v174_v33, %v128_v12 }
 0x15b   :  { %v197_v38 = vadd.f32 %v193_v36, %v178_v34  ;;  %v191_v39 = vpop.permute.xlu1 %190 }
 0x15c   :  { %v194_v40 = vsel %vm192_vm2, %v189_v35, %v191_v39 }
 0x15d   :  { %v211_v41 = vadd.f32 %v204_v24, %v197_v38  ;;  %v198_v42 = vadd.f32 %v194_v40, %v179_v37 }
 0x15f   :  { %v213_v43 = vmax.f32 %v211_v41, 0.0  ;;  %v212_v44 = vadd.f32 %v209_v25, %v198_v42 }
 0x161   :  { %215 = vst [vmem:[#allocation2] sm:$0xff] %v213_v43  ;;  %v214_v45 = vmax.f32 %v212_v44, 0.0 }
 0x163   :  { %216 = vst [vmem:[#allocation2 + $0x8] sm:$0xff] %v214_v45 }
 0x164   :  { %267 = shalt.err (!%p264_p4)
}
 0x165   :  { %s268_s12 = scalar_lea.hbm %s364_s4, 256 }
 0x166   :  { %p269_p5 = scmp.ne.s32.totalorder %s364_s4, %s268_s12  ;;  %p272_p6 = scmp.lt.u32.totalorder %s268_s12, %s364_s4 }
 0x168   :  { %p274_p7 = pnand %p272_p6, %p269_p5 }
 0x16a   :  { %277 = shalt.err (!%p274_p7)
}
 0x16b   :  { %s285_s17 = smov 128   ;;  %s286_s18 = smov 8  }
 0x16c   :  { %228 = dma.vmem_to_hbm [thread:$0]  %s223_s8, 256, %s364_s4, [#allocation3], %s285_s17, %s285_s17, %s286_s18  }
 0x16d   :  { %278 = dma.done.wait [#allocation3], 256  }
 0x16e   :  { %279 = vsyncadd [#allocation3], 4294967040 }
 0x16f   :  { %232 = vsyncpa [#allocation3], 1 }

</bundles_post_ra>
